<compile_context>
chip_gen: v5e
topology: v5e:2x2
jax: 0.10.0
libtpu: 0.0.40
codegen_flags: <defaults>
</compile_context>

<pallas_src>
import functools
import math

import jax
import jax.numpy as jnp
from jax.experimental import pallas as pl
from jax.experimental.pallas import tpu as pltpu


def _attention_kernel(x_ref, wqkv_ref, wo_ref, bout_ref, o_ref, *, heads):
    # x_ref:    (n, dim)                  f32   one batch element
    # wqkv_ref: (3*heads, dim, dim_head)  bf16  per-head Q|K|V weights, (K,N)
    #                                           layout, scale folded into Q
    # wo_ref:   (heads, dim_head, dim)    bf16  per-head output projection
    # bout_ref: (1, dim)                  f32   output bias
    # o_ref:    (n, dim)                        output block
    n, dim = x_ref.shape
    h3 = wqkv_ref.shape[0]                      # 3 * heads

    # bf16 MXU operands (v6e/v7x native; v5e MXU also takes bf16 inputs).
    x = x_ref[...].astype(jnp.bfloat16)                         # (n, dim)
    xb = jnp.broadcast_to(x, (h3, n, dim))                      # (3h, n, dim)

    # Head-batched QKV projection: one batched MXU matmul, f32 accumulation.
    qkv = jnp.einsum('hnd,hde->hne', xb, wqkv_ref[...],
                     preferred_element_type=jnp.float32)        # (3h, n, d)
    # Slices along the major (untiled) axis -> no relayout.
    q = qkv[:heads].astype(jnp.bfloat16)                        # (h, n, d)
    k = qkv[heads:2 * heads].astype(jnp.bfloat16)
    v = qkv[2 * heads:].astype(jnp.bfloat16)

    # Scores (scale already folded into the Q weights).
    s = jnp.einsum('hne,hme->hnm', q, k,
                   preferred_element_type=jnp.float32)          # (h, n, n) f32

    # TODO(synk): optional `mask` argument of the PyTorch forward is not
    # implemented (the module is used with mask=None).

    # Numerically-stable softmax in f32; denominator via EUP approx reciprocal.
    s = s - jnp.max(s, axis=-1, keepdims=True)
    p = jnp.exp(s)
    p = p * pl.reciprocal(jnp.sum(p, axis=-1, keepdims=True), approx=True)

    # Per-head attention output, head-batched.
    ho = jnp.einsum('hnm,hme->hne', p.astype(jnp.bfloat16), v,
                    preferred_element_type=jnp.float32)         # (h, n, d) f32

    # Output projection accumulated head by head -- replaces the
    # 'b h n d -> b n (h d)' concat + single matmul with per-head accumulation.
    acc = jnp.zeros((n, dim), jnp.float32)
    for h in range(heads):                                      # small & static
        acc = acc + jnp.dot(ho[h].astype(jnp.bfloat16), wo_ref[h],
                            preferred_element_type=jnp.float32)

    # TODO(synk): output last dim (= dim = 32) is < 128 lanes, so this store is
    # masked; a lane-dense (1, n*dim) slab would need an in-kernel
    # sublane->lane reshape that Mosaic may not lower at these shapes.
    o_ref[...] = (acc + bout_ref[...]).astype(o_ref.dtype)


def attention_forward(x, w_qkv, w_out, b_out, *, heads, dim_head):
    """Pallas TPU forward of the PyTorch Attention module (mask=None path)."""
    b, n, dim = x.shape
    inner = heads * dim_head
    assert w_qkv.shape == (3 * inner, dim)
    assert w_out.shape == (dim, inner)
    scale = dim_head ** (-0.5)

    # ---- one-time weight prep: per-head (K, N) layouts, scale folded into Q,
    # ---- bf16 MXU operands (halves weight DMA traffic too).
    wq, wk, wv = jnp.split(w_qkv, 3, axis=0)                    # each (inner, dim)

    def per_head(w):                                            # -> (h, dim, d)
        return w.reshape(heads, dim_head, dim).transpose(0, 2, 1)

    wqkv_stacked = jnp.concatenate(
        [per_head(wq) * scale, per_head(wk), per_head(wv)],
        axis=0).astype(jnp.bfloat16)                            # (3h, dim, d)
    wo_heads = w_out.T.reshape(heads, dim_head, dim).astype(jnp.bfloat16)
    b_out2 = b_out.reshape(1, dim).astype(jnp.float32)

    # Fold batch into rows; one batch element per grid step (grid stays
    # "parallel" so both v7x TensorCores get work).
    x2 = x.reshape(b * n, dim)

    kernel = functools.partial(_attention_kernel, heads=heads)

    out = pl.pallas_call(
        kernel,
        out_shape=jax.ShapeDtypeStruct((b * n, dim), x.dtype),
        grid=(b,),
        in_specs=[
            pl.BlockSpec((n, dim), lambda i: (i, 0)),
            pl.BlockSpec((3 * heads, dim, dim_head), lambda i: (0, 0, 0)),
            pl.BlockSpec((heads, dim_head, dim), lambda i: (0, 0, 0)),
            pl.BlockSpec((1, dim), lambda i: (0, 0)),
        ],
        out_specs=pl.BlockSpec((n, dim), lambda i: (i, 0)),
        compiler_params=pltpu.CompilerParams(
            dimension_semantics=("parallel",)),
    )(x2, wqkv_stacked, wo_heads, b_out2)
    return out.reshape(b, n, dim)


def attention_reference(x, w_qkv, w_out, b_out, *, heads, dim_head):
    """Pure-JAX f32 reference mirroring the PyTorch forward (mask=None)."""
    b, n, dim = x.shape
    inner = heads * dim_head
    scale = dim_head ** (-0.5)
    qkv = x @ w_qkv.T                                           # (b, n, 3*inner)
    q, k, v = jnp.split(qkv, 3, axis=-1)

    def to_heads(t):
        return t.reshape(b, n, heads, dim_head).transpose(0, 2, 1, 3)

    q, k, v = map(to_heads, (q, k, v))                          # (b, h, n, d)
    dots = jnp.einsum('bhid,bhjd->bhij', q, k) * scale
    attn = jax.nn.softmax(dots, axis=-1)
    out = jnp.einsum('bhij,bhjd->bhid', attn, v)
    out = out.transpose(0, 2, 1, 3).reshape(b, n, inner)
    return out @ w_out.T + b_out


if __name__ == "__main__":
    # Small shapes consistent with the module's forward: x is (b, n, dim).
    B, N, DIM = 2, 8, 32
    HEADS, DIM_HEAD = 4, 16
    INNER = HEADS * DIM_HEAD

    key = jax.random.PRNGKey(0)
    kx, kqkv, kw, kb = jax.random.split(key, 4)

    x = jax.random.normal(kx, (B, N, DIM), dtype=jnp.float32)
    # Deterministic parameter init (synthetic; not loaded from a checkpoint).
    w_qkv = jax.random.normal(kqkv, (3 * INNER, DIM), dtype=jnp.float32) / math.sqrt(DIM)
    w_out = jax.random.normal(kw, (DIM, INNER), dtype=jnp.float32) / math.sqrt(INNER)
    b_out = jax.random.normal(kb, (DIM,), dtype=jnp.float32) * 0.01

    out = attention_forward(x, w_qkv, w_out, b_out, heads=HEADS, dim_head=DIM_HEAD)
    out = jax.block_until_ready(out)

    ref = attention_reference(x, w_qkv, w_out, b_out, heads=HEADS, dim_head=DIM_HEAD)
    assert out.shape == (B, N, DIM)
    # bf16 MXU operands (f32 accumulation / f32 softmax) -> loosened tolerance
    # vs. the pure-f32 reference, as anticipated in the perf review.
    assert jnp.allclose(out, ref, atol=1e-1, rtol=1e-1), "mismatch vs reference"

    print("KERNEL_OK")
</pallas_src>

<mosaic_0001>
module attributes {stable_mosaic.version = 11 : i64} {
  func.func @_attention_kernel(%arg0: i32, %arg1: memref<8x32xf32, #tpu.memory_space<vmem>>, %arg2: memref<12x32x16xbf16, #tpu.memory_space<vmem>>, %arg3: memref<4x16x32xbf16, #tpu.memory_space<vmem>>, %arg4: memref<1x32xf32, #tpu.memory_space<vmem>>, %arg5: memref<8x32xf32, #tpu.memory_space<vmem>>) attributes {dimension_semantics = [#tpu.dimension_semantics<parallel>], iteration_bounds = array<i64: 2>, scalar_prefetch = 0 : i64, scratch_operands = 0 : i64, tpu.core_type = #tpu.core_type<tc>, window_params = [{transform_indices = @transform_0, window_bounds = array<i64: 8, 32>}, {pipeline_mode = #tpu.pipeline_mode<synchronous>, transform_indices = @transform_1, window_bounds = array<i64: 12, 32, 16>}, {pipeline_mode = #tpu.pipeline_mode<synchronous>, transform_indices = @transform_2, window_bounds = array<i64: 4, 16, 32>}, {pipeline_mode = #tpu.pipeline_mode<synchronous>, transform_indices = @transform_3, window_bounds = array<i64: 1, 32>}, {transform_indices = @transform_4, window_bounds = array<i64: 8, 32>}]} {
    %c0 = arith.constant 0 : index
    %c0_0 = arith.constant 0 : index
    %0 = vector.load %arg1[%c0, %c0_0] : memref<8x32xf32, #tpu.memory_space<vmem>>, vector<8x32xf32>
    %1 = arith.truncf %0 : vector<8x32xf32> to vector<8x32xbf16>
    %2 = vector.shape_cast %1 : vector<8x32xbf16> to vector<1x8x32xbf16>
    %3 = vector.broadcast %2 : vector<1x8x32xbf16> to vector<12x8x32xbf16>
    %c0_1 = arith.constant 0 : index
    %c0_2 = arith.constant 0 : index
    %c0_3 = arith.constant 0 : index
    %4 = vector.load %arg2[%c0_1, %c0_2, %c0_3] : memref<12x32x16xbf16, #tpu.memory_space<vmem>>, vector<12x32x16xbf16>
    "tpu.trace_start"() <{level = 10 : i32, message = "hnd,hde->hne"}> : () -> ()
    %cst = arith.constant dense<0.000000e+00> : vector<12x8x16xf32>
    %5 = tpu.matmul %3, %4, %cst {dimension_numbers = #tpu.dot_dimension_numbers<[2], [1], [1], [2], [0, 0, 0, 1, 1, 2], [0], [0]>} : vector<12x8x32xbf16>, vector<12x32x16xbf16>, vector<12x8x16xf32> -> vector<12x8x16xf32>
    "tpu.trace_stop"() : () -> ()
    %6 = vector.extract_strided_slice %5 {offsets = [0, 0, 0], sizes = [4, 8, 16], strides = [1, 1, 1]} : vector<12x8x16xf32> to vector<4x8x16xf32>
    %7 = arith.truncf %6 : vector<4x8x16xf32> to vector<4x8x16xbf16>
    %8 = vector.extract_strided_slice %5 {offsets = [4, 0, 0], sizes = [4, 8, 16], strides = [1, 1, 1]} : vector<12x8x16xf32> to vector<4x8x16xf32>
    %9 = arith.truncf %8 : vector<4x8x16xf32> to vector<4x8x16xbf16>
    %10 = vector.extract_strided_slice %5 {offsets = [8, 0, 0], sizes = [4, 8, 16], strides = [1, 1, 1]} : vector<12x8x16xf32> to vector<4x8x16xf32>
    %11 = arith.truncf %10 : vector<4x8x16xf32> to vector<4x8x16xbf16>
    "tpu.trace_start"() <{level = 10 : i32, message = "hne,hme->hnm"}> : () -> ()
    %cst_4 = arith.constant dense<0.000000e+00> : vector<4x8x8xf32>
    %12 = tpu.matmul %7, %9, %cst_4 {dimension_numbers = #tpu.dot_dimension_numbers<[2], [2], [1], [1], [0, 0, 0, 1, 1, 1], [0], [0]>} : vector<4x8x16xbf16>, vector<4x8x16xbf16>, vector<4x8x8xf32> -> vector<4x8x8xf32>
    "tpu.trace_stop"() : () -> ()
    %cst_5 = arith.constant dense<0xFF800000> : vector<4x8xf32>
    %13 = vector.multi_reduction <maximumf>, %12, %cst_5 [2] : vector<4x8x8xf32> to vector<4x8xf32>
    %14 = vector.shape_cast %13 : vector<4x8xf32> to vector<4x8x1xf32>
    %15 = vector.broadcast %14 : vector<4x8x1xf32> to vector<4x8x8xf32>
    %16 = arith.subf %12, %15 : vector<4x8x8xf32>
    %17 = math.exp %16 : vector<4x8x8xf32>
    %cst_6 = arith.constant dense<0.000000e+00> : vector<4x8xf32>
    %18 = vector.multi_reduction <add>, %17, %cst_6 [2] : vector<4x8x8xf32> to vector<4x8xf32>
    %19 = vector.shape_cast %18 : vector<4x8xf32> to vector<4x8x1xf32>
    %20 = tpu.reciprocal %19 {approx = true} : vector<4x8x1xf32> -> vector<4x8x1xf32>
    %21 = vector.broadcast %20 : vector<4x8x1xf32> to vector<4x8x8xf32>
    %22 = arith.mulf %17, %21 : vector<4x8x8xf32>
    %23 = arith.truncf %22 : vector<4x8x8xf32> to vector<4x8x8xbf16>
    "tpu.trace_start"() <{level = 10 : i32, message = "hnm,hme->hne"}> : () -> ()
    %cst_7 = arith.constant dense<0.000000e+00> : vector<4x8x16xf32>
    %24 = tpu.matmul %23, %11, %cst_7 {dimension_numbers = #tpu.dot_dimension_numbers<[2], [1], [1], [2], [0, 0, 0, 1, 1, 2], [0], [0]>} : vector<4x8x8xbf16>, vector<4x8x16xbf16>, vector<4x8x16xf32> -> vector<4x8x16xf32>
    %cst_8 = arith.constant 0.000000e+00 : f32
    "tpu.trace_stop"() : () -> ()
    %25 = vector.broadcast %cst_8 : f32 to vector<8x32xf32>
    %26 = vector.extract_strided_slice %24 {offsets = [0, 0, 0], sizes = [1, 8, 16], strides = [1, 1, 1]} : vector<4x8x16xf32> to vector<1x8x16xf32>
    %27 = vector.shape_cast %26 : vector<1x8x16xf32> to vector<8x16xf32>
    %28 = arith.truncf %27 : vector<8x16xf32> to vector<8x16xbf16>
    %c0_9 = arith.constant 0 : index
    %c0_10 = arith.constant 0 : index
    %c0_11 = arith.constant 0 : index
    %29 = vector.load %arg3[%c0_9, %c0_10, %c0_11] : memref<4x16x32xbf16, #tpu.memory_space<vmem>>, vector<1x16x32xbf16>
    %30 = vector.shape_cast %29 : vector<1x16x32xbf16> to vector<16x32xbf16>
    %cst_12 = arith.constant dense<0.000000e+00> : vector<8x32xf32>
    %31 = tpu.matmul %28, %30, %cst_12 {dimension_numbers = #tpu.dot_dimension_numbers<[1], [0], [0], [1], [0, 0, 1, 1], [], []>} : vector<8x16xbf16>, vector<16x32xbf16>, vector<8x32xf32> -> vector<8x32xf32>
    %32 = arith.addf %25, %31 : vector<8x32xf32>
    %33 = vector.extract_strided_slice %24 {offsets = [1, 0, 0], sizes = [1, 8, 16], strides = [1, 1, 1]} : vector<4x8x16xf32> to vector<1x8x16xf32>
    %34 = vector.shape_cast %33 : vector<1x8x16xf32> to vector<8x16xf32>
    %35 = arith.truncf %34 : vector<8x16xf32> to vector<8x16xbf16>
    %c1 = arith.constant 1 : index
    %c0_13 = arith.constant 0 : index
    %c0_14 = arith.constant 0 : index
    %36 = vector.load %arg3[%c1, %c0_13, %c0_14] : memref<4x16x32xbf16, #tpu.memory_space<vmem>>, vector<1x16x32xbf16>
    %37 = vector.shape_cast %36 : vector<1x16x32xbf16> to vector<16x32xbf16>
    %cst_15 = arith.constant dense<0.000000e+00> : vector<8x32xf32>
    %38 = tpu.matmul %35, %37, %cst_15 {dimension_numbers = #tpu.dot_dimension_numbers<[1], [0], [0], [1], [0, 0, 1, 1], [], []>} : vector<8x16xbf16>, vector<16x32xbf16>, vector<8x32xf32> -> vector<8x32xf32>
    %39 = arith.addf %32, %38 : vector<8x32xf32>
    %40 = vector.extract_strided_slice %24 {offsets = [2, 0, 0], sizes = [1, 8, 16], strides = [1, 1, 1]} : vector<4x8x16xf32> to vector<1x8x16xf32>
    %41 = vector.shape_cast %40 : vector<1x8x16xf32> to vector<8x16xf32>
    %42 = arith.truncf %41 : vector<8x16xf32> to vector<8x16xbf16>
    %c2 = arith.constant 2 : index
    %c0_16 = arith.constant 0 : index
    %c0_17 = arith.constant 0 : index
    %43 = vector.load %arg3[%c2, %c0_16, %c0_17] : memref<4x16x32xbf16, #tpu.memory_space<vmem>>, vector<1x16x32xbf16>
    %44 = vector.shape_cast %43 : vector<1x16x32xbf16> to vector<16x32xbf16>
    %cst_18 = arith.constant dense<0.000000e+00> : vector<8x32xf32>
    %45 = tpu.matmul %42, %44, %cst_18 {dimension_numbers = #tpu.dot_dimension_numbers<[1], [0], [0], [1], [0, 0, 1, 1], [], []>} : vector<8x16xbf16>, vector<16x32xbf16>, vector<8x32xf32> -> vector<8x32xf32>
    %46 = arith.addf %39, %45 : vector<8x32xf32>
    %47 = vector.extract_strided_slice %24 {offsets = [3, 0, 0], sizes = [1, 8, 16], strides = [1, 1, 1]} : vector<4x8x16xf32> to vector<1x8x16xf32>
    %48 = vector.shape_cast %47 : vector<1x8x16xf32> to vector<8x16xf32>
    %49 = arith.truncf %48 : vector<8x16xf32> to vector<8x16xbf16>
    %c3 = arith.constant 3 : index
    %c0_19 = arith.constant 0 : index
    %c0_20 = arith.constant 0 : index
    %50 = vector.load %arg3[%c3, %c0_19, %c0_20] : memref<4x16x32xbf16, #tpu.memory_space<vmem>>, vector<1x16x32xbf16>
    %51 = vector.shape_cast %50 : vector<1x16x32xbf16> to vector<16x32xbf16>
    %cst_21 = arith.constant dense<0.000000e+00> : vector<8x32xf32>
    %52 = tpu.matmul %49, %51, %cst_21 {dimension_numbers = #tpu.dot_dimension_numbers<[1], [0], [0], [1], [0, 0, 1, 1], [], []>} : vector<8x16xbf16>, vector<16x32xbf16>, vector<8x32xf32> -> vector<8x32xf32>
    %53 = arith.addf %46, %52 : vector<8x32xf32>
    %c0_22 = arith.constant 0 : index
    %c0_23 = arith.constant 0 : index
    %54 = vector.load %arg4[%c0_22, %c0_23] : memref<1x32xf32, #tpu.memory_space<vmem>>, vector<1x32xf32>
    %55 = vector.broadcast %54 : vector<1x32xf32> to vector<8x32xf32>
    %56 = arith.addf %53, %55 : vector<8x32xf32>
    %c0_24 = arith.constant 0 : index
    %c0_25 = arith.constant 0 : index
    %57 = vector.load %arg5[%c0_24, %c0_25] : memref<8x32xf32, #tpu.memory_space<vmem>>, vector<8x32xf32>
    tpu.vector_store %arg5[%c0_24, %c0_25], %56 {strides = array<i32>} : memref<8x32xf32, #tpu.memory_space<vmem>>, vector<8x32xf32>,
    return
  }
  func.func @transform_0(%arg0: i32) -> (i32, i32) {
    %c0_i32 = arith.constant 0 : i32
    %c0_i32_0 = arith.constant 0 : i32
    return %arg0, %c0_i32 : i32, i32
  }
  func.func @transform_1(%arg0: i32) -> (i32, i32, i32) {
    %c0_i32 = arith.constant 0 : i32
    %c0_i32_0 = arith.constant 0 : i32
    %c0_i32_1 = arith.constant 0 : i32
    %c0_i32_2 = arith.constant 0 : i32
    return %c0_i32, %c0_i32_0, %c0_i32_1 : i32, i32, i32
  }
  func.func @transform_2(%arg0: i32) -> (i32, i32, i32) {
    %c0_i32 = arith.constant 0 : i32
    %c0_i32_0 = arith.constant 0 : i32
    %c0_i32_1 = arith.constant 0 : i32
    %c0_i32_2 = arith.constant 0 : i32
    return %c0_i32, %c0_i32_0, %c0_i32_1 : i32, i32, i32
  }
  func.func @transform_3(%arg0: i32) -> (i32, i32) {
    %c0_i32 = arith.constant 0 : i32
    %c0_i32_0 = arith.constant 0 : i32
    %c0_i32_1 = arith.constant 0 : i32
    return %c0_i32, %c0_i32_0 : i32, i32
  }
  func.func @transform_4(%arg0: i32) -> (i32, i32) {
    %c0_i32 = arith.constant 0 : i32
    %c0_i32_0 = arith.constant 0 : i32
    return %arg0, %c0_i32 : i32, i32
  }
}

</mosaic_0001>

<bundles_post_ra>
// kernel: tpu_custom_call.1
= control target key start
LH: loop header
LB: loop body
LE: loop exit
PB: predicated region body
PF: predicated region fallthrough
CT: control target
= control target key end

     0   :  { %9 = vsyncpa [#allocation3], 0  ;;  %s1483_s0 = inlined_call_operand.vmem [shape: f32[16,32], index: 0, kind: input, shape index: {}]   ;;  %s1484_s1 = inlined_call_operand.vmem [shape: bf16[12,32,16], index: 1, kind: input, shape index: {}]   ;;  %s1485_s2 = inlined_call_operand.vmem [shape: bf16[4,16,32], index: 2, kind: input, shape index: {}]   ;;  %s1486_s3 = inlined_call_operand.vmem [shape: f32[1,32], index: 3, kind: input, shape index: {}]   ;;  %s1487_s4 = inlined_call_operand.hbm [shape: f32[16,32], index: 4, kind: output, shape index: {}]  }
   0x1   :  { %11 = vsyncpa [#allocation3 + $0x1], 0  ;;  %s1274_s15 = smov 0   ;;  %s1276_s16 = smov 0  }
   0x2   :  { %s1278_s17 = smov 0   ;;  %s1280_s18 = smov 0  }
   0x3 LB: > { %s1295_s19 = sadd.s32 4294967295, %s1247_s18   ;;  %s949_s20 = sadd.s32 4294967294, %s1247_s18   ;;  %s1247_s18 = sphi %s1280_s18, %s1493_s18   ;;  %s1243_s17 = sphi %s1278_s17, %s1492_s17   ;;  %s1239_s16 = sphi %s1276_s16, %s1491_s16   ;;  %s1235_s15 = sphi %s1274_s15, %s1490_s15  }
   0x4   : > { %s1299_s21 = sadd.s32 1, %s1247_s18   ;;  %s113_s22 = sadd.s32 1, %s1243_s17 }
   0x5   : > { %s110_s23 = ssub.s32 %s1247_s18, %s1299_s21  ;;  %p123_p0 = scmp.ne.s32.totalorder %s1243_s17, %s1239_s16 }
   0x6   : > { %p111_p1 = scmp.eq.s32.totalorder %s110_s23, 0  ;;  %p124_p2 = scmp.eq.s32.totalorder %s1295_s19, 1 }
   0x7   : > { %p129_p3 = scmp.ne.s32.totalorder %s1239_s16, %s1235_s15  ;;  %p130_p4 = scmp.eq.s32.totalorder %s949_s20, 1 }
   0x8   : > { %s1310_s24 = scalar_select %p111_p1, %s1243_s17, %s113_s22  }
   0x9   : > { %p1312_p5 = por %p124_p2, %p123_p0  ;;  %p1316_p6 = por %p130_p4, %p129_p3 }
   0xa   : > { %p952_p7 = scmp.ge.s32.totalorder %s1247_s18, 1  ;;  %p164_p8 = scmp.lt.s32.totalorder %s1247_s18, 3 }
   0xc   : > { %p165_p9 = pnand %p952_p7, %p164_p8 }
   0xd   : > { %p189_p10 = scmp.lt.s32.totalorder (!%p165_p9), %s1295_s19, 1  ;;  %s186_s11 = sand.u32 (!%p165_p9), 1, %s1239_s16  }
   0xe   : > { %168 = sbr.rel (%p165_p9) target bundleno = 857 (0x359), region = 36  ;;  %s953_s12 = sshll.u32 (!%p165_p9), %s186_s11, 3 }
   0xf   : > { %s188_s28 = scalar_lea.vmem (!%p165_p9), [#allocation2], %s953_s12  ;;  %s1205_s9 = scalar_lea.hbm (!%p165_p9), %s1487_s4, 16 }
  0x10   : > { %s887_s29 = sshll.u32 (!%p165_p9), %s188_s28, 4  ;;  %s888_s29 = int_to_ptr.vmem [resolvable:$true] %s887_s29 }
  0x13   : > { %v1102_v0 = vld [vmem:[%s1484_s1 + $0x8] sm:$0xff]  ;;  %v1104_v1 = vld [vmem:[%s1484_s1 + $0x18] sm:$0xff]  ;;  %v1101_v4 = vld [vmem:[%s1484_s1] sm:$0xff]  ;;  %s190_s13 = scalar_select %p189_p10, %s1295_s19, 1  ;;  %vm256_vm0 = vcmask 261120   ;;  %vm560_vm1 = vcmask 130048  }
  0x14   : > { %v1106_v2 = vld [vmem:[%s1484_s1 + $0x28] sm:$0xff]  ;;  %v1108_v3 = vld [vmem:[%s1484_s1 + $0x38] sm:$0xff]  ;;  %266 = vmatpush.bf16.msra.mxu0 %v1102_v0  ;;  %291 = vmatpush.bf16.msra.mxu1 %v1104_v1  ;;  %v1103_v5 = vld [vmem:[%s1484_s1 + $0x10] sm:$0xff]  ;;  %vm689_vm2 = vcmask 1043456   ;;  %vm637_vm3 = vcmask 64512  }
  0x15   : > { %316 = vmatpush.bf16.msra.mxu2 %v1106_v2  ;;  %341 = vmatpush.bf16.msra.mxu3 %v1108_v3  ;;  %v1105_v6 = vld [vmem:[%s1484_s1 + $0x20] sm:$0xff]  ;;  %v1107_v7 = vld [vmem:[%s1484_s1 + $0x30] sm:$0xff]  ;;  %s954_s27 = sshll.u32 %s190_s13, 3  ;;  %v1110_v8 = vld [vmem:[%s1484_s1 + $0x48] sm:$0xff]  ;;  %s1098_s13 = sshll.u32 %s1295_s19, 3 }
  0x16   : > { %v1112_v9 = vld [vmem:[%s1484_s1 + $0x58] sm:$0xff]  ;;  %s192_s8 = scalar_lea.vmem %s1483_s0, %s954_s27  ;;  %v1114_v12 = vld [vmem:[%s1484_s1 + $0x68] sm:$0xff]  ;;  %v1109_v14 = vld [vmem:[%s1484_s1 + $0x40] sm:$0xff]  ;;  %s885_s22 = scalar_lea.hbm %s1487_s4, %s1098_s13 }
  0x17   : > { %v194_v10 = vld [vmem:[%s192_s8] sm:$0xff]  ;;  %v1116_v13 = vld [vmem:[%s1484_s1 + $0x78] sm:$0xff]  ;;  %v1111_v15 = vld [vmem:[%s1484_s1 + $0x50] sm:$0xff]  ;;  %s889_s30 = sshll.u32 %s885_s22, 4  ;;  %s875_s19 = scalar_lea.sflag [#allocation3], %s186_s11  ;;  %s890_s30 = int_to_ptr.hbm [resolvable:$true] %s889_s30 }
  0x18   : > { %267 = vmatpush.bf16.msra.mxu0 %v1101_v4  ;;  %292 = vmatpush.bf16.msra.mxu1 %v1103_v5  ;;  %v195_v11 = vpack.c.bf16 %v194_v10, %v194_v10  ;;  %v1113_v16 = vld [vmem:[%s1484_s1 + $0x60] sm:$0xff]  ;;  %v1115_v17 = vld [vmem:[%s1484_s1 + $0x70] sm:$0xff]  ;;  %v1118_v18 = vld [vmem:[%s1484_s1 + $0x88] sm:$0xff]  ;;  %s1199_s5 = sshra.s32 %s890_s30, 4  ;;  %s1200_s5 = int_to_ptr.hbm [resolvable:$true] %s1199_s5 }
  0x19   : > { %317 = vmatpush.bf16.msra.mxu2 %v1105_v6  ;;  %342 = vmatpush.bf16.msra.mxu3 %v1107_v7  ;;  %v1120_v19 = vld [vmem:[%s1484_s1 + $0x98] sm:$0xff]  ;;  %v1122_v20 = vld [vmem:[%s1484_s1 + $0xa8] sm:$0xff]  ;;  %v1121_v21 = vld [vmem:[%s1484_s1 + $0xa0] sm:$0xff]  ;;  %s1201_s6 = scalar_lea.hbm %s1200_s5, 8  ;;  %p1206_p0 = scmp.lt.s32.totalorder %s1200_s5, %s1487_s4 }
  0x1a   : > { %v1117_v22 = vld [vmem:[%s1484_s1 + $0x80] sm:$0xff]  ;;  %v1119_v23 = vld [vmem:[%s1484_s1 + $0x90] sm:$0xff]  ;;  %v1124_v24 = vld [vmem:[%s1484_s1 + $0xb8] sm:$0xff]  ;;  %p1202_p11 = scmp.ne.s32.totalorder %s1200_s5, %s1201_s6  ;;  %p1207_p1 = scmp.lt.s32.totalorder %s1205_s9, %s1201_s6 }
  0x1b   : > { %963 = vmatmul.msk.bf16.vlgmr.msra.gmra.mxu0 %vm256_vm0, %v195_v11  ;;  %972 = vmatmul.msk.bf16.vlgmr.msra.gmra.mxu1 %vm256_vm0, %v195_v11  ;;  %v1123_v25 = vld [vmem:[%s1484_s1 + $0xb0] sm:$0xff] }
  0x1c   : > { %366 = vmatpush.bf16.msrb.mxu0 %v1110_v8  ;;  %391 = vmatpush.bf16.msrb.mxu1 %v1112_v9  ;;  %p1203_p12 = pnand %p1202_p11, %p1312_p5  ;;  %p1208_p2 = por %p1207_p1, %p1206_p0 }
  0x1d   : > { %981 = vmatmul.msk.bf16.vlgmr.msra.gmra.mxu2 %vm256_vm0, %v195_v11  ;;  %990 = vmatmul.msk.bf16.vlgmr.msra.gmra.mxu3 %vm256_vm0, %v195_v11 }
  0x1e   : > { %416 = vmatpush.bf16.msrb.mxu2 %v1114_v12  ;;  %441 = vmatpush.bf16.msrb.mxu3 %v1116_v13  ;;  %p1204_p13 = pneg %p1203_p12 }
  0x20   : > { %367 = vmatpush.bf16.msrb.mxu0 %v1109_v14  ;;  %392 = vmatpush.bf16.msrb.mxu1 %v1111_v15  ;;  %p1209_p3 = pnand %p1208_p2, %p1204_p13 }
  0x22   : > { %417 = vmatpush.bf16.msrb.mxu2 %v1113_v16  ;;  %442 = vmatpush.bf16.msrb.mxu3 %v1115_v17 }
  0x24   : > { %466 = vmatpush.bf16.msra.mxu0 %v1118_v18  ;;  %491 = vmatpush.bf16.msra.mxu1 %v1120_v19 }
  0x26   : > { %516 = vmatpush.bf16.msra.mxu2 %v1122_v20  ;;  %541 = vmatpush.bf16.msra.mxu3 %v1124_v24 }
  0x28   : > { %467 = vmatpush.bf16.msra.mxu0 %v1117_v22  ;;  %492 = vmatpush.bf16.msra.mxu1 %v1119_v23 }
  0x2a   : > { %517 = vmatpush.bf16.msra.mxu2 %v1121_v21  ;;  %542 = vmatpush.bf16.msra.mxu3 %v1123_v25 }
  0x2b   : > { %999 = vmatmul.msk.bf16.vlgmr.msrb.gmra.mxu0 %vm256_vm0, %v195_v11  ;;  %1008 = vmatmul.msk.bf16.vlgmr.msrb.gmra.mxu1 %vm256_vm0, %v195_v11 }
  0x2d   : > { %1017 = vmatmul.msk.bf16.vlgmr.msrb.gmra.mxu2 %vm256_vm0, %v195_v11  ;;  %1026 = vmatmul.msk.bf16.vlgmr.msrb.gmra.mxu3 %vm256_vm0, %v195_v11 }
  0x3b   : > { %1035 = vmatmul.msk.bf16.vlgmr.msra.gmra.mxu0 %vm256_vm0, %v195_v11  ;;  %1044 = vmatmul.msk.bf16.vlgmr.msra.gmra.mxu1 %vm256_vm0, %v195_v11 }
  0x3d   : > { %1053 = vmatmul.msk.bf16.vlgmr.msra.gmra.mxu2 %vm256_vm0, %v195_v11  ;;  %1062 = vmatmul.msk.bf16.vlgmr.msra.gmra.mxu3 %vm256_vm0, %v195_v11 }
  0x98   : > { %v269_v26 = vpop.f32.mrf.mxu0  ;;  %v294_v27 = vpop.f32.mrf.mxu1 }
  0x99   : > { %v549_v42 = vpack.c.bf16 %v294_v27, %v294_v27  ;;  %v548_v47 = vpack.c.bf16 %v269_v26, %v269_v26 }
  0xa0   : > { %v319_v28 = vpop.f32.mrf.mxu2  ;;  %v344_v29 = vpop.f32.mrf.mxu3 }
  0xa1   : > { %v271_v30 = vpop.f32.mrf.mxu0  ;;  %v296_v31 = vpop.f32.mrf.mxu1  ;;  %v550_v52 = vpack.c.bf16 %v319_v28, %v319_v28  ;;  %v551_v53 = vpack.c.bf16 %v344_v29, %v344_v29 }
  0xa8   : > { %v321_v32 = vpop.f32.mrf.mxu2  ;;  %v346_v33 = vpop.f32.mrf.mxu3 }
  0xa9   : > { %v369_v34 = vpop.f32.mrf.mxu0  ;;  %v394_v35 = vpop.f32.mrf.mxu1 }
  0xaa   : > { %v552_v36 = vpack.c.bf16 %v369_v34, %v369_v34  ;;  %v553_v37 = vpack.c.bf16 %v394_v35, %v394_v35 }
  0xac   : > { %v565_v38 = vsel %vm560_vm1, %v552_v36, 0  ;;  %v584_v39 = vsel %vm560_vm1, %v553_v37, 0 }
  0xad   : > { %574 = vmatpush.bf16.xpose.msrb.mxu0 %v565_v38  ;;  %593 = vmatpush.bf16.xpose.msrb.mxu1 %v584_v39 }
  0xb0   : > { %v419_v40 = vpop.f32.mrf.mxu2  ;;  %v444_v41 = vpop.f32.mrf.mxu3 }
  0xb1   : > { %v554_v43 = vpack.c.bf16 %v419_v40, %v419_v40  ;;  %v555_v44 = vpack.c.bf16 %v444_v41, %v444_v41  ;;  %v371_v45 = vpop.f32.mrf.mxu0  ;;  %v396_v46 = vpop.f32.mrf.mxu1 }
  0xb3   : > { %v603_v48 = vsel %vm560_vm1, %v554_v43, 0  ;;  %v622_v49 = vsel %vm560_vm1, %v555_v44, 0 }
  0xb4   : > { %612 = vmatpush.bf16.xpose.msrb.mxu2 %v603_v48  ;;  %631 = vmatpush.bf16.xpose.msrb.mxu3 %v622_v49 }
  0xb5   : > { %1063 = vmatmul.msk.bf16.vlgmr.msrb.gmra.mxu0 %vm560_vm1, %v548_v47  ;;  %1064 = vmatmul.msk.bf16.vlgmr.msrb.gmra.mxu1 %vm560_vm1, %v549_v42 }
  0xb8   : > { %v421_v50 = vpop.f32.mrf.mxu2  ;;  %v446_v51 = vpop.f32.mrf.mxu3 }
  0xb9   : > { %v469_v54 = vpop.f32.mrf.mxu0  ;;  %v494_v55 = vpop.f32.mrf.mxu1 }
  0xba   : > { %v556_v56 = vpack.c.bf16 %v469_v54, %v469_v54  ;;  %v557_v57 = vpack.c.bf16 %v494_v55, %v494_v55  ;;  %v1125_v54 = vld [vmem:[%s1485_s2] sm:$0xff]  ;;  %v1126_v55 = vld [vmem:[%s1485_s2 + $0x8] sm:$0xff] }
  0xbb   : > { %1065 = vmatmul.msk.bf16.vlgmr.msrb.gmra.mxu2 %vm560_vm1, %v550_v52  ;;  %1066 = vmatmul.msk.bf16.vlgmr.msrb.gmra.mxu3 %vm560_vm1, %v551_v53 }
  0xbc   : > { %v691_v58 = vsel %vm689_vm2, %v556_v56, 0  ;;  %v710_v59 = vsel %vm689_vm2, %v557_v57, 0  ;;  %v1127_v56 = vld [vmem:[%s1485_s2 + $0x10] sm:$0xff]  ;;  %v1128_v57 = vld [vmem:[%s1485_s2 + $0x18] sm:$0xff] }
  0xbd   : > { %700 = vmatpush.bf16.msra.mxu0 %v691_v58  ;;  %719 = vmatpush.bf16.msra.mxu1 %v710_v59 }
  0xc0   : > { %v519_v60 = vpop.f32.mrf.mxu2  ;;  %v544_v1 = vpop.f32.mrf.mxu3 }
  0xc1   : > { %v558_v61 = vpack.c.bf16 %v519_v60, %v519_v60  ;;  %v471_v62 = vpop.f32.mrf.mxu0  ;;  %v496_v63 = vpop.f32.mrf.mxu1  ;;  %v559_v2 = vpack.c.bf16 %v544_v1, %v544_v1  ;;  %808 = vmatpush.bf16.msrb.mxu1 %v1125_v54  ;;  %786 = vmatpush.bf16.msrb.mxu0 %v1126_v55 }
  0xc3   : > { %v729_v0 = vsel %vm689_vm2, %v558_v61, 0  ;;  %v748_v4 = vsel %vm689_vm2, %v559_v2, 0 }
  0xc4   : > { %738 = vmatpush.bf16.msra.mxu2 %v729_v0  ;;  %757 = vmatpush.bf16.msra.mxu3 %v748_v4 }
  0xc8   : > { %v521_v3 = vpop.f32.mrf.mxu2  ;;  %v546_v5 = vpop.f32.mrf.mxu3  ;;  %834 = vmatpush.bf16.msrb.mxu2 %v1127_v56  ;;  %861 = vmatpush.bf16.msrb.mxu3 %v1128_v57 }
 0x132   : > { %v576_v6 = vpop.f32.mrf.mxu0  ;;  %v595_v7 = vpop.f32.mrf.mxu1 }
 0x133   : > { %v638_v8 = vsel %vm637_vm3, %v576_v6, -inf  ;;  %v641_v11 = vsel %vm637_vm3, %v595_v7, -inf }
 0x134   : > { %639 = vmax.xlane.f32.xlu1 %v638_v8 }
 0x13a   : > { %v578_v9 = vpop.f32.mrf.mxu0  ;;  %v597_v10 = vpop.f32.mrf.mxu1 }
 0x13c   : > { %642 = vmax.xlane.f32.xlu1 %v641_v11 }
 0x13e   : > { %v614_v12 = vpop.f32.mrf.mxu2  ;;  %v633_v13 = vpop.f32.mrf.mxu3 }
 0x13f   : > { %v644_v14 = vsel %vm637_vm3, %v614_v12, -inf  ;;  %v647_v17 = vsel %vm637_vm3, %v633_v13, -inf }
 0x140   : > { %645 = vmax.xlane.f32.xlu0 %v644_v14 }
 0x146   : > { %v616_v15 = vpop.f32.mrf.mxu2  ;;  %v635_v16 = vpop.f32.mrf.mxu3 }
 0x148   : > { %648 = vmax.xlane.f32.xlu0 %v647_v17 }
 0x1a7   : > { %v640_v18 = vpop.xlane.xlu1 %639 }
 0x1a8   : > { %v650_v19 = vsub.f32 %v576_v6, %v640_v18 }
 0x1aa   : > { %v654_v20 = vmul.f32 1.442695, %v650_v19 }
 0x1ac   : > { %1169 = vpow2.f32 %v654_v20 }
 0x1af   : > { %v643_v21 = vpop.xlane.xlu1 %642 }
 0x1b0   : > { %v651_v22 = vsub.f32 %v595_v7, %v643_v21 }
 0x1b2   : > { %v1170_v23 = vpop.eup %1169  ;;  %v656_v24 = vmul.f32 1.442695, %v651_v22 }
 0x1b3   : > { %v646_v25 = vpop.xlane.xlu0 %645  ;;  %v662_v26 = vsel %vm637_vm3, %v1170_v23, 0.0 }
 0x1b4   : > { %1171 = vpow2.f32 %v656_v24  ;;  %v652_v27 = vsub.f32 %v614_v12, %v646_v25  ;;  %663 = vadd.xlane.f32.xlu0 %v662_v26 }
 0x1b6   : > { %v658_v28 = vmul.f32 1.442695, %v652_v27 }
 0x1b8   : > { %1173 = vpow2.f32 %v658_v28 }
 0x1ba   : > { %v1172_v29 = vpop.eup %1171 }
 0x1bb   : > { %v649_v30 = vpop.xlane.xlu0 %648  ;;  %v665_v31 = vsel %vm637_vm3, %v1172_v29, 0.0 }
 0x1bc   : > { %v653_v32 = vsub.f32 %v633_v13, %v649_v30  ;;  %666 = vadd.xlane.f32.xlu1 %v665_v31  ;;  %v1168_v13 = vld [vmem:[%s1486_s3] ss:$0 sm:$0xff] }
 0x1be   : > { %v1174_v33 = vpop.eup %1173  ;;  %v660_v34 = vmul.f32 1.442695, %v653_v32 }
 0x1bf   : > { %v668_v35 = vsel %vm637_vm3, %v1174_v33, 0.0 }
 0x1c0   : > { %1175 = vpow2.f32 %v660_v34  ;;  %669 = vadd.xlane.f32.xlu2 %v668_v35 }
 0x1c6   : > { %v1176_v36 = vpop.eup %1175 }
 0x1c7   : > { %v671_v37 = vsel %vm637_vm3, %v1176_v36, 0.0 }
 0x1c8   : > { %672 = vadd.xlane.f32.xlu2 %v671_v37 }
 0x227   : > { %v664_v38 = vpop.xlane.xlu0 %663 }
 0x228   : > { %1177 = vrcp.f32 %v664_v38 }
 0x22e   : > { %v1178_v39 = vpop.eup %1177 }
 0x22f   : > { %v678_v40 = vmul.f32 %v1178_v39, %v1170_v23  ;;  %v667_v41 = vpop.xlane.xlu1 %666 }
 0x230   : > { %1179 = vrcp.f32 %v667_v41 }
 0x231   : > { %v682_v42 = vpack.c.bf16 %v678_v40, %v678_v40 }
 0x233   : > { %v670_v43 = vpop.xlane.xlu2 %669  ;;  %1067 = vmatmul.msk.bf16.vlgmr.msra.gmra.mxu0 %vm637_vm3, %v682_v42 }
 0x234   : > { %1181 = vrcp.f32 %v670_v43 }
 0x236   : > { %v1180_v44 = vpop.eup %1179 }
 0x237   : > { %v679_v45 = vmul.f32 %v1180_v44, %v1172_v29 }
 0x239   : > { %v683_v46 = vpack.c.bf16 %v679_v45, %v679_v45 }
 0x23a   : > { %v1182_v47 = vpop.eup %1181 }
 0x23b   : > { %v680_v48 = vmul.f32 %v1182_v47, %v1174_v33  ;;  %v673_v49 = vpop.xlane.xlu2 %672  ;;  %1068 = vmatmul.msk.bf16.vlgmr.msra.gmra.mxu1 %vm637_vm3, %v683_v46 }
 0x23c   : > { %1183 = vrcp.f32 %v673_v49 }
 0x23d   : > { %v684_v50 = vpack.c.bf16 %v680_v48, %v680_v48 }
 0x23f   : > { %1069 = vmatmul.msk.bf16.vlgmr.msra.gmra.mxu2 %vm637_vm3, %v684_v50 }
 0x242   : > { %v1184_v51 = vpop.eup %1183 }
 0x243   : > { %v681_v52 = vmul.f32 %v1184_v51, %v1176_v36 }
 0x245   : > { %v685_v53 = vpack.c.bf16 %v681_v52, %v681_v52 }
 0x247   : > { %1070 = vmatmul.msk.bf16.vlgmr.msra.gmra.mxu3 %vm637_vm3, %v685_v53 }
 0x2b0   : > { %v702_v58 = vpop.f32.mrf.mxu0 }
 0x2b1   : > { %v763_v59 = vpack.c.bf16 %v702_v58, %v702_v58 }
 0x2b3   : > { %1082 = vmatmul.msk.bf16.vlgmr.msrb.gmra.mxu1 %vm560_vm1, %v763_v59 }
 0x2b8   : > { %v704_v60 = vpop.f32.mrf.mxu0  ;;  %v721_v61 = vpop.f32.mrf.mxu1 }
 0x2b9   : > { %v766_v62 = vpack.c.bf16 %v721_v61, %v721_v61 }
 0x2bb   : > { %1077 = vmatmul.msk.bf16.vlgmr.msrb.gmra.mxu0 %vm560_vm1, %v766_v62 }
 0x2c0   : > { %v723_v63 = vpop.f32.mrf.mxu1 }
 0x2c2   : > { %v740_v0 = vpop.f32.mrf.mxu2 }
 0x2c3   : > { %v814_v1 = vpack.c.bf16 %v740_v0, %v740_v0 }
 0x2c5   : > { %1089 = vmatmul.msk.bf16.vlgmr.msrb.gmra.mxu2 %vm560_vm1, %v814_v1 }
 0x2ca   : > { %v742_v2 = vpop.f32.mrf.mxu2  ;;  %v759_v3 = vpop.f32.mrf.mxu3 }
 0x2cb   : > { %v841_v4 = vpack.c.bf16 %v759_v3, %v759_v3 }
 0x2cd   : > { %1096 = vmatmul.msk.bf16.vlgmr.msrb.gmra.mxu3 %vm560_vm1, %v841_v4 }
 0x2d2   : > { %v761_v5 = vpop.f32.mrf.mxu3 }
 0x330   : > { %v810_v6 = vpop.f32.mrf.mxu1 }
 0x338   : > { %v788_v7 = vpop.f32.mrf.mxu0  ;;  %v812_v8 = vpop.f32.mrf.mxu1 }
 0x339   : > { %v811_v11 = vadd.f32 %v810_v6, %v788_v7 }
 0x340   : > { %v790_v9 = vpop.f32.mrf.mxu0 }
 0x348   : > { %v836_v10 = vpop.f32.mrf.mxu2 }
 0x349   : > { %v840_v12 = vadd.f32 %v836_v10, %v811_v11 }
 0x350   : > { %v838_v14 = vpop.f32.mrf.mxu2  ;;  %v863_v15 = vpop.f32.mrf.mxu3 }
 0x351   : > { %v867_v16 = vadd.f32 %v863_v15, %v840_v12 }
 0x353   : > { %v872_v17 = vadd.f32 %v1168_v13, %v867_v16 }
 0x355   : > { %873 = vst.msk [vmem:[%s188_s28] sm:$0xff] %vm256_vm0, %v872_v17 }
 0x356   : > { %1212 = shalt.err (!%p1209_p3)
}
 0x357   : > { %1129 = dma.vmem_to_hbm [thread:$0]  (%p1312_p5), %s888_s29, 128, %s890_s30, %s875_s19  }
 0x358   : > { %v865_v18 = vpop.f32.mrf.mxu3 }
 0x359 PF: > { %p1135_p4 = scmp.ge.s32.totalorder %s1247_s18, 2  ;;  %s901_s11 = sand.u32 1, %s1235_s15  }
 0x35a   : > { %s902_s13 = scalar_lea.sflag [#allocation3], %s901_s11 }
 0x35b   : > { %p1132_p7 = pnand %p1135_p4, %p1316_p6 }
 0x35d   : > { %p1133_p8 = pneg %p1132_p7 }
 0x35f   : > { %1230 = dma.done.wait (%p1133_p8), %s902_s13, 128  }
 0x360   : > { %1232 = vsyncadd (%p1133_p8), %s902_s13, 4294967168  ;;  %p14_p9 = scmp.ge.s32.totalorder %s1299_s21, 4   ;;  %s1490_s15 = smov %s1239_s16 }
 0x361   : > { %s1491_s16 = smov %s1243_s17  ;;  %s1492_s17 = smov %s1310_s24 }
 0x362   : > { %s1493_s18 = smov %s1299_s21  ;;  %16 = sbr.rel (!%p14_p9) target bundleno = 3 (0x3), region = 74 }
 0x367   :  { %908 = vsyncpa [#allocation3], 1 }
 0x368   :  { %910 = vsyncpa [#allocation3 + $0x1], 1 }

</bundles_post_ra>
